<compile_context>
chip_gen: v5e
topology: v5e:2x2
jax: 0.10.0
libtpu: 0.0.40
codegen_flags: <defaults>
</compile_context>

<pallas_src>
import functools

import jax
import jax.numpy as jnp
from jax.experimental import pallas as pl
from jax.experimental.pallas import tpu as pltpu

IN_F = 128
HID = 256   # hidden_channels (module default)
MID = 64
OUT_F = 1


def _decoder_kernel(x_ref, w1t_ref, b1_ref, w2t_ref, b2_ref, w3_ref, b3_ref,
                    o_ref):
    cdt = w1t_ref.dtype  # matmul operand dtype (bf16 or f32); accumulation is f32

    # Row tile stays in its natural orientation: (tile, 128).
    x = x_ref[...].astype(cdt)

    # L1: (tile, 128) @ (128, 256) -> (tile, 256), f32 accumulation.
    h1 = jnp.dot(x, w1t_ref[...], preferred_element_type=jnp.float32)
    h1 = jnp.maximum(h1 + b1_ref[...], 0.0)        # bias (1, 256) broadcasts over rows
    # Dropout(p=0.1): identity in eval mode.

    # L2: (tile, 256) @ (256, 64) -> (tile, 64).
    h2 = jnp.dot(h1.astype(cdt), w2t_ref[...], preferred_element_type=jnp.float32)
    h2 = jnp.maximum(h2 + b2_ref[...], 0.0)

    # L3 (64 -> 1): VPU multiply + lane reduction (degenerate 1-column matmul
    # is not worth an MXU push); result is (tile, 1) f32.
    h3 = jnp.sum(h2 * w3_ref[...], axis=-1, keepdims=True) + b3_ref[...]

    # sigmoid = 1 / (1 + exp(-x)); exact division on the tiny (tile, 1) result.
    o_ref[...] = (1.0 / (1.0 + jnp.exp(-h3))).astype(o_ref.dtype)


def _round_up(a, m):
    return (a + m - 1) // m * m


@functools.partial(jax.jit, static_argnames=("tile_n", "use_bf16"))
def sketch_decoder_forward(x, params, *, tile_n=2048, use_bf16=True):
    """x: [N, 128] float32; params in PyTorch nn.Linear layout. Returns [N, 1] f32."""
    w1, b1, w2, b2, w3, b3 = params
    n = x.shape[0]

    # Row tile: multiple of 128.  Cap so there are at least 2 grid steps when
    # N > 128 (lets the "parallel" axis split across v7x's 2 TensorCores) and
    # never exceed tile_n (~2048 rows keeps buffers well inside scoped VMEM on
    # v5e/v6e/v7x while amortizing the ~0.35 us per-grid-step overhead).
    half = _round_up(pl.cdiv(n, 2), 128) if n > 128 else 128
    tile = max(128, min(_round_up(tile_n, 128), half))
    num_tiles = pl.cdiv(n, tile)        # no padding: last block may be partial

    cdt = jnp.bfloat16 if use_bf16 else jnp.float32
    w1t = w1.T.astype(cdt)                            # (IN_F, HID) -- MXU stationary
    w2t = w2.T.astype(cdt)                            # (HID, MID)
    b1r = b1.reshape(1, HID).astype(jnp.float32)      # row -> broadcasts over sublanes
    b2r = b2.reshape(1, MID).astype(jnp.float32)
    w3r = w3.reshape(1, MID).astype(jnp.float32)      # (1, 64) row for VPU reduce
    b3r = b3.reshape(1, 1).astype(jnp.float32)

    out = pl.pallas_call(
        _decoder_kernel,
        out_shape=jax.ShapeDtypeStruct((n, OUT_F), jnp.float32),
        grid_spec=pltpu.PrefetchScalarGridSpec(
            num_scalar_prefetch=0,
            grid=(num_tiles,),
            in_specs=[
                pl.BlockSpec((tile, IN_F), lambda i: (i, 0)),   # x row tile (streamed)
                pl.BlockSpec((IN_F, HID), lambda i: (0, 0)),    # w1.T (resident)
                pl.BlockSpec((1, HID), lambda i: (0, 0)),       # b1
                pl.BlockSpec((HID, MID), lambda i: (0, 0)),     # w2.T (resident)
                pl.BlockSpec((1, MID), lambda i: (0, 0)),       # b2
                pl.BlockSpec((1, MID), lambda i: (0, 0)),       # w3 row
                pl.BlockSpec((1, 1), lambda i: (0, 0)),         # b3
            ],
            out_specs=pl.BlockSpec((tile, OUT_F), lambda i: (i, 0)),
        ),
        compiler_params=pltpu.CompilerParams(
            dimension_semantics=("parallel",)),
    )(x, w1t, b1r, w2t, b2r, w3r, b3r)

    return out


def init_params(key):
    """Deterministic init mirroring nn.Linear (PyTorch layout: W [out, in], b [out])."""
    ks = jax.random.split(key, 6)

    def linear(kw, kb, fan_in, fan_out):
        bound = 1.0 / jnp.sqrt(fan_in)
        w = jax.random.uniform(kw, (fan_out, fan_in), jnp.float32,
                               minval=-bound, maxval=bound)
        b = jax.random.uniform(kb, (fan_out,), jnp.float32,
                               minval=-bound, maxval=bound)
        return w, b

    w1, b1 = linear(ks[0], ks[1], IN_F, HID)
    w2, b2 = linear(ks[2], ks[3], HID, MID)
    w3, b3 = linear(ks[4], ks[5], MID, OUT_F)
    return (w1, b1, w2, b2, w3, b3)


def reference_forward(x, params):
    """Pure-JAX reference (eval mode: dropout = identity)."""
    w1, b1, w2, b2, w3, b3 = params
    hp = jax.lax.Precision.HIGHEST
    h = jnp.maximum(jnp.dot(x, w1.T, precision=hp) + b1, 0.0)
    h = jnp.maximum(jnp.dot(h, w2.T, precision=hp) + b2, 0.0)
    h = jnp.dot(h, w3.T, precision=hp) + b3
    return jax.nn.sigmoid(h)


if __name__ == "__main__":
    key = jax.random.PRNGKey(0)
    k_param, k_x = jax.random.split(key)

    params = init_params(k_param)

    # x_dict['loop']: N=200 loop nodes (NOT a tile multiple -> exercises the
    # ragged last block of the cdiv grid), 128 features.
    n = 200
    x_dict = {"loop": jax.random.normal(k_x, (n, IN_F), jnp.float32)}

    ref = reference_forward(x_dict["loop"], params)

    # f32 matmul path (exact sigmoid, 2 grid steps with a partial tail).
    out_f32 = jax.block_until_ready(
        sketch_decoder_forward(x_dict["loop"], params, use_bf16=False))
    assert out_f32.shape == (n, OUT_F)
    assert jnp.max(jnp.abs(out_f32 - ref)) < 1e-4, "f32 kernel mismatch vs reference"

    # bf16-operand path (default), same ragged grid.
    out_bf16 = jax.block_until_ready(
        sketch_decoder_forward(x_dict["loop"], params, use_bf16=True))
    assert out_bf16.shape == (n, OUT_F)
    assert jnp.max(jnp.abs(out_bf16 - ref)) < 2e-2, "bf16 kernel mismatch vs reference"

    print("KERNEL_OK")
</pallas_src>

<mosaic_0001>
module attributes {stable_mosaic.version = 11 : i64} {
  func.func @_decoder_kernel(%arg0: i32, %arg1: memref<128x128xf32, #tpu.memory_space<vmem>>, %arg2: memref<128x256xf32, #tpu.memory_space<vmem>>, %arg3: memref<1x256xf32, #tpu.memory_space<vmem>>, %arg4: memref<256x64xf32, #tpu.memory_space<vmem>>, %arg5: memref<1x64xf32, #tpu.memory_space<vmem>>, %arg6: memref<1x64xf32, #tpu.memory_space<vmem>>, %arg7: memref<1x1xf32, #tpu.memory_space<vmem>>, %arg8: memref<128x1xf32, #tpu.memory_space<vmem>>) attributes {dimension_semantics = [#tpu.dimension_semantics<parallel>], iteration_bounds = array<i64: 2>, scalar_prefetch = 0 : i64, scratch_operands = 0 : i64, tpu.core_type = #tpu.core_type<tc>, window_params = [{transform_indices = @transform_0, window_bounds = array<i64: 128, 128>}, {pipeline_mode = #tpu.pipeline_mode<synchronous>, transform_indices = @transform_1, window_bounds = array<i64: 128, 256>}, {pipeline_mode = #tpu.pipeline_mode<synchronous>, transform_indices = @transform_2, window_bounds = array<i64: 1, 256>}, {pipeline_mode = #tpu.pipeline_mode<synchronous>, transform_indices = @transform_3, window_bounds = array<i64: 256, 64>}, {pipeline_mode = #tpu.pipeline_mode<synchronous>, transform_indices = @transform_4, window_bounds = array<i64: 1, 64>}, {pipeline_mode = #tpu.pipeline_mode<synchronous>, transform_indices = @transform_5, window_bounds = array<i64: 1, 64>}, {pipeline_mode = #tpu.pipeline_mode<synchronous>, transform_indices = @transform_6, window_bounds = array<i64: 1, 1>}, {transform_indices = @transform_7, window_bounds = array<i64: 128, 1>}]} {
    %c0 = arith.constant 0 : index
    %c0_0 = arith.constant 0 : index
    %0 = vector.load %arg1[%c0, %c0_0] : memref<128x128xf32, #tpu.memory_space<vmem>>, vector<128x128xf32>
    %c0_1 = arith.constant 0 : index
    %c0_2 = arith.constant 0 : index
    %1 = vector.load %arg2[%c0_1, %c0_2] : memref<128x256xf32, #tpu.memory_space<vmem>>, vector<128x256xf32>
    %cst = arith.constant dense<0.000000e+00> : vector<128x256xf32>
    %2 = tpu.matmul %0, %1, %cst {dimension_numbers = #tpu.dot_dimension_numbers<[1], [0], [0], [1], [0, 0, 1, 1], [], []>} : vector<128x128xf32>, vector<128x256xf32>, vector<128x256xf32> -> vector<128x256xf32>
    %c0_3 = arith.constant 0 : index
    %c0_4 = arith.constant 0 : index
    %3 = vector.load %arg3[%c0_3, %c0_4] : memref<1x256xf32, #tpu.memory_space<vmem>>, vector<1x256xf32>
    %4 = vector.broadcast %3 : vector<1x256xf32> to vector<128x256xf32>
    %5 = arith.addf %2, %4 : vector<128x256xf32>
    %cst_5 = arith.constant 0.000000e+00 : f32
    %6 = vector.broadcast %cst_5 : f32 to vector<128x256xf32>
    %7 = arith.maximumf %5, %6 : vector<128x256xf32>
    %c0_6 = arith.constant 0 : index
    %c0_7 = arith.constant 0 : index
    %8 = vector.load %arg4[%c0_6, %c0_7] : memref<256x64xf32, #tpu.memory_space<vmem>>, vector<256x64xf32>
    %cst_8 = arith.constant dense<0.000000e+00> : vector<128x64xf32>
    %9 = tpu.matmul %7, %8, %cst_8 {dimension_numbers = #tpu.dot_dimension_numbers<[1], [0], [0], [1], [0, 0, 1, 1], [], []>} : vector<128x256xf32>, vector<256x64xf32>, vector<128x64xf32> -> vector<128x64xf32>
    %c0_9 = arith.constant 0 : index
    %c0_10 = arith.constant 0 : index
    %10 = vector.load %arg5[%c0_9, %c0_10] : memref<1x64xf32, #tpu.memory_space<vmem>>, vector<1x64xf32>
    %11 = vector.broadcast %10 : vector<1x64xf32> to vector<128x64xf32>
    %12 = arith.addf %9, %11 : vector<128x64xf32>
    %cst_11 = arith.constant 0.000000e+00 : f32
    %13 = vector.broadcast %cst_11 : f32 to vector<128x64xf32>
    %14 = arith.maximumf %12, %13 : vector<128x64xf32>
    %c0_12 = arith.constant 0 : index
    %c0_13 = arith.constant 0 : index
    %15 = vector.load %arg6[%c0_12, %c0_13] : memref<1x64xf32, #tpu.memory_space<vmem>>, vector<1x64xf32>
    %16 = vector.broadcast %15 : vector<1x64xf32> to vector<128x64xf32>
    %17 = arith.mulf %14, %16 : vector<128x64xf32>
    %cst_14 = arith.constant dense<0.000000e+00> : vector<128xf32>
    %18 = vector.multi_reduction <add>, %17, %cst_14 [1] : vector<128x64xf32> to vector<128xf32>
    %19 = vector.shape_cast %18 : vector<128xf32> to vector<128x1xf32>
    %c0_15 = arith.constant 0 : index
    %c0_16 = arith.constant 0 : index
    %20 = vector.load %arg7[%c0_15, %c0_16] : memref<1x1xf32, #tpu.memory_space<vmem>>, vector<1x1xf32>
    %21 = vector.broadcast %20 : vector<1x1xf32> to vector<128x1xf32>
    %22 = arith.addf %19, %21 : vector<128x1xf32>
    %cst_17 = arith.constant 0.000000e+00 : f32
    %23 = vector.broadcast %cst_17 : f32 to vector<128x1xf32>
    %24 = arith.subf %23, %22 : vector<128x1xf32>
    %25 = math.exp %24 : vector<128x1xf32>
    %cst_18 = arith.constant 1.000000e+00 : f32
    %26 = vector.broadcast %cst_18 : f32 to vector<128x1xf32>
    %27 = arith.addf %26, %25 : vector<128x1xf32>
    %cst_19 = arith.constant 1.000000e+00 : f32
    %28 = vector.broadcast %cst_19 : f32 to vector<128x1xf32>
    %29 = arith.divf %28, %27 : vector<128x1xf32>
    %c0_20 = arith.constant 0 : index
    %c0_21 = arith.constant 0 : index
    %30 = vector.load %arg8[%c0_20, %c0_21] : memref<128x1xf32, #tpu.memory_space<vmem>>, vector<128x1xf32>
    tpu.vector_store %arg8[%c0_20, %c0_21], %29 {strides = array<i32>} : memref<128x1xf32, #tpu.memory_space<vmem>>, vector<128x1xf32>,
    return
  }
  func.func @transform_0(%arg0: i32) -> (i32, i32) {
    %c0_i32 = arith.constant 0 : i32
    %c0_i32_0 = arith.constant 0 : i32
    return %arg0, %c0_i32 : i32, i32
  }
  func.func @transform_1(%arg0: i32) -> (i32, i32) {
    %c0_i32 = arith.constant 0 : i32
    %c0_i32_0 = arith.constant 0 : i32
    %c0_i32_1 = arith.constant 0 : i32
    return %c0_i32, %c0_i32_0 : i32, i32
  }
  func.func @transform_2(%arg0: i32) -> (i32, i32) {
    %c0_i32 = arith.constant 0 : i32
    %c0_i32_0 = arith.constant 0 : i32
    %c0_i32_1 = arith.constant 0 : i32
    return %c0_i32, %c0_i32_0 : i32, i32
  }
  func.func @transform_3(%arg0: i32) -> (i32, i32) {
    %c0_i32 = arith.constant 0 : i32
    %c0_i32_0 = arith.constant 0 : i32
    %c0_i32_1 = arith.constant 0 : i32
    return %c0_i32, %c0_i32_0 : i32, i32
  }
  func.func @transform_4(%arg0: i32) -> (i32, i32) {
    %c0_i32 = arith.constant 0 : i32
    %c0_i32_0 = arith.constant 0 : i32
    %c0_i32_1 = arith.constant 0 : i32
    return %c0_i32, %c0_i32_0 : i32, i32
  }
  func.func @transform_5(%arg0: i32) -> (i32, i32) {
    %c0_i32 = arith.constant 0 : i32
    %c0_i32_0 = arith.constant 0 : i32
    %c0_i32_1 = arith.constant 0 : i32
    return %c0_i32, %c0_i32_0 : i32, i32
  }
  func.func @transform_6(%arg0: i32) -> (i32, i32) {
    %c0_i32 = arith.constant 0 : i32
    %c0_i32_0 = arith.constant 0 : i32
    %c0_i32_1 = arith.constant 0 : i32
    return %c0_i32, %c0_i32_0 : i32, i32
  }
  func.func @transform_7(%arg0: i32) -> (i32, i32) {
    %c0_i32 = arith.constant 0 : i32
    %c0_i32_0 = arith.constant 0 : i32
    return %arg0, %c0_i32 : i32, i32
  }
}

</mosaic_0001>

<bundles_post_ra>
// kernel: sketch_decoder_forward.1
= control target key start
LH: loop header
LB: loop body
LE: loop exit
PB: predicated region body
PF: predicated region fallthrough
CT: control target
= control target key end

     0   :  { %s2200_s0 = inlined_call_operand.vmem [shape: f32[200,128], index: 0, kind: input, shape index: {}]   ;;  %s2201_s1 = inlined_call_operand.vmem [shape: f32[128,256], index: 1, kind: input, shape index: {}]   ;;  %s2202_s2 = inlined_call_operand.vmem [shape: f32[1,256], index: 2, kind: input, shape index: {}]   ;;  %s2203_s3 = inlined_call_operand.vmem [shape: f32[256,64], index: 3, kind: input, shape index: {}]   ;;  %s2204_s4 = inlined_call_operand.vmem [shape: f32[1,64], index: 4, kind: input, shape index: {}]   ;;  %s2205_s5 = inlined_call_operand.vmem [shape: f32[1,64], index: 5, kind: input, shape index: {}]   ;;  %s2206_s6 = inlined_call_operand.<no memory space> [shape: f32[1,1], index: 6, kind: input, shape index: {}]   ;;  %s2207_s7 = inlined_call_operand.vmem [shape: f32[200,1], index: 7, kind: output, shape index: {}]  }
   0x1   :  { %v12_v0 = vstv %s2206_s6 }
   0x2   :  { %13 = vst [vmem:[#allocation2] sm:$0x1] %v12_v0 }
   0x3   :  { %s1699_s26 = smov 0   ;;  %s1701_s27 = smov 0  }
   0x4   :  { %s1703_s28 = smov 0  }
   0x5 LB: > { %s1712_s6 = sadd.s32 4294967295, %s1622_s28   ;;  %s1714_s29 = sadd.s32 1, %s1622_s28   ;;  %s1622_s28 = sphi %s1703_s28, %s2216_s28   ;;  %s1618_s27 = sphi %s1701_s27, %s2215_s27   ;;  %s1614_s26 = sphi %s1699_s26, %s2214_s26  }
   0x6   : > { %s175_s30 = ssub.s32 %s1622_s28, %s1714_s29  ;;  %s178_s8 = sadd.s32 1, %s1618_s27 }
   0x7   : > { %p176_p0 = scmp.eq.s32.totalorder %s175_s30, 0  ;;  %p188_p1 = scmp.ne.s32.totalorder %s1618_s27, %s1614_s26 }
   0x8   : > { %p189_p2 = scmp.eq.s32.totalorder %s1712_s6, 1  ;;  %p1389_p3 = scmp.ge.s32.totalorder %s1622_s28, 1 }
   0x9   : > { %s1722_s9 = scalar_select %p176_p0, %s1618_s27, %s178_s8  }
   0xa   : > { %p1724_p4 = por %p189_p2, %p188_p1  ;;  %p248_p5 = scmp.lt.s32.totalorder %s1622_s28, 3 }
   0xc   : > { %p249_p6 = pnand %p1389_p3, %p248_p5 }
   0xd   : > { %s1777_s25 = sshll.u32 (!%p249_p6), %s1712_s6, 4  ;;  %s280_s16 = sand.u32 (!%p249_p6), 1, %s1614_s26  }
   0xe   : > { %252 = sbr.rel (%p249_p6) target bundleno = 639 (0x27f), region = 48  ;;  %p288_p7 = scmp.lt.s32.totalorder (!%p249_p6), %s1777_s25, 24 }
   0xf   : > { %s1390_s17 = sshll.u32 (!%p249_p6), %s280_s16, 7 }
  0x10   : > { %s2050_s26 = scalar_lea.vmem (!%p249_p6), [#allocation3], %s1390_s17  }
  0x13   : > { %v348_v1 = vld [vmem:[%s2201_s1 + $0xf0] sm:$0xff]  ;;  %v346_v2 = vld [vmem:[%s2201_s1 + $0xe0] sm:$0xff]  ;;  %v349_v3 = vld [vmem:[%s2201_s1 + $0xf8] sm:$0xff]  ;;  %s289_s20 = scalar_select %p288_p7, %s1777_s25, 24  ;;  %vm720_vm0 = vcmask 523264   ;;  %vm1093_vm3 = vcmask 7168  }
  0x14   : > { %356 = vmatpush.msra.mxu0 %v348_v1  ;;  %421 = vmatpush.msra.mxu1 %v349_v3  ;;  %v347_v4 = vld [vmem:[%s2201_s1 + $0xe8] sm:$0xff]  ;;  %v344_v5 = vld [vmem:[%s2201_s1 + $0xd0] sm:$0xff]  ;;  %v345_v6 = vld [vmem:[%s2201_s1 + $0xd8] sm:$0xff]  ;;  %s1118_s18 = ssub.s32 (%p1724_p4), 25, %s1777_s25  ;;  %s1410_s19 = sshll.u32 (%p1724_p4), %s1712_s6, 7 }
  0x15   : > { %v342_v7 = vld [vmem:[%s2201_s1 + $0xc0] sm:$0xff]  ;;  %v343_v8 = vld [vmem:[%s2201_s1 + $0xc8] sm:$0xff]  ;;  %v340_v9 = vld [vmem:[%s2201_s1 + $0xb0] sm:$0xff]  ;;  %s1392_s12 = sshll.u32 %s289_s20, 3  ;;  %p1119_p8 = scmp.lt.s32.totalorder (%p1724_p4), %s1118_s18, 16 }
  0x16   : > { %357 = vmatpush.msra.mxu0 %v346_v2  ;;  %422 = vmatpush.msra.mxu1 %v347_v4  ;;  %v341_v10 = vld [vmem:[%s2201_s1 + $0xb8] sm:$0xff]  ;;  %v338_v11 = vld [vmem:[%s2201_s1 + $0xa0] sm:$0xff]  ;;  %v339_v12 = vld [vmem:[%s2201_s1 + $0xa8] sm:$0xff]  ;;  %s1826_s23 = scalar_lea.vmem %s2200_s0, %s1392_s12  ;;  %s2103_s20 = scalar_lea.vmem (%p1724_p4), %s2207_s7, %s1410_s19  }
  0x17   : > { %v336_v13 = vld [vmem:[%s2201_s1 + $0x90] sm:$0xff]  ;;  %v337_v14 = vld [vmem:[%s2201_s1 + $0x98] sm:$0xff]  ;;  %v334_v15 = vld [vmem:[%s2201_s1 + $0x80] sm:$0xff] }
  0x18   : > { %358 = vmatpush.msra.mxu0 %v344_v5  ;;  %423 = vmatpush.msra.mxu1 %v345_v6  ;;  %v335_v16 = vld [vmem:[%s2201_s1 + $0x88] sm:$0xff]  ;;  %v332_v17 = vld [vmem:[%s2201_s1 + $0x70] sm:$0xff]  ;;  %v333_v18 = vld [vmem:[%s2201_s1 + $0x78] sm:$0xff] }
  0x19   : > { %v330_v19 = vld [vmem:[%s2201_s1 + $0x60] sm:$0xff]  ;;  %v331_v20 = vld [vmem:[%s2201_s1 + $0x68] sm:$0xff]  ;;  %v328_v21 = vld [vmem:[%s2201_s1 + $0x50] sm:$0xff] }
  0x1a   : > { %359 = vmatpush.msra.mxu0 %v342_v7  ;;  %424 = vmatpush.msra.mxu1 %v343_v8  ;;  %v329_v22 = vld [vmem:[%s2201_s1 + $0x58] sm:$0xff]  ;;  %v326_v23 = vld [vmem:[%s2201_s1 + $0x40] sm:$0xff]  ;;  %v327_v24 = vld [vmem:[%s2201_s1 + $0x48] sm:$0xff] }
  0x1b   : > { %v324_v25 = vld [vmem:[%s2201_s1 + $0x30] sm:$0xff]  ;;  %v325_v26 = vld [vmem:[%s2201_s1 + $0x38] sm:$0xff]  ;;  %v322_v27 = vld [vmem:[%s2201_s1 + $0x20] sm:$0xff] }
  0x1c   : > { %360 = vmatpush.msra.mxu0 %v340_v9  ;;  %425 = vmatpush.msra.mxu1 %v341_v10  ;;  %v323_v28 = vld [vmem:[%s2201_s1 + $0x28] sm:$0xff]  ;;  %v320_v29 = vld [vmem:[%s2201_s1 + $0x10] sm:$0xff]  ;;  %v321_v30 = vld [vmem:[%s2201_s1 + $0x18] sm:$0xff] }
  0x1d   : > { %v318_v31 = vld [vmem:[%s2201_s1] sm:$0xff]  ;;  %v319_v32 = vld [vmem:[%s2201_s1 + $0x8] sm:$0xff]  ;;  %v304_v35 = vld [vmem:[%s1826_s23 + $0x10] sm:$0xff] }
  0x1e   : > { %361 = vmatpush.msra.mxu0 %v338_v11  ;;  %426 = vmatpush.msra.mxu1 %v339_v12  ;;  %v302_v33 = vld [vmem:[%s1826_s23] sm:$0xff]  ;;  %v303_v34 = vld [vmem:[%s1826_s23 + $0x8] sm:$0xff]  ;;  %v305_v36 = vld [vmem:[%s1826_s23 + $0x18] sm:$0xff] }
  0x1f   : > { %v306_v37 = vld [vmem:[%s1826_s23 + $0x20] sm:$0xff]  ;;  %v307_v38 = vld [vmem:[%s1826_s23 + $0x28] sm:$0xff]  ;;  %v308_v39 = vld [vmem:[%s1826_s23 + $0x30] sm:$0xff] }
  0x20   : > { %362 = vmatpush.msra.mxu0 %v336_v13  ;;  %427 = vmatpush.msra.mxu1 %v337_v14  ;;  %v309_v40 = vld [vmem:[%s1826_s23 + $0x38] sm:$0xff]  ;;  %v310_v41 = vld [vmem:[%s1826_s23 + $0x40] sm:$0xff]  ;;  %v532_v43 = vld [vmem:[%s2203_s3 + $0x70] sm:$0xff] }
  0x21   : > { %v533_v42 = vld [vmem:[%s2203_s3 + $0x78] sm:$0xff]  ;;  %v548_v45 = vld [vmem:[%s2203_s3 + $0xf0] sm:$0xff]  ;;  %v531_v46 = vld [vmem:[%s2203_s3 + $0x68] sm:$0xff] }
  0x22   : > { %363 = vmatpush.msra.mxu0 %v334_v15  ;;  %428 = vmatpush.msra.mxu1 %v335_v16  ;;  %v549_v44 = vld [vmem:[%s2203_s3 + $0xf8] sm:$0xff]  ;;  %v311_v47 = vld [vmem:[%s1826_s23 + $0x48] sm:$0xff]  ;;  %v530_v48 = vld [vmem:[%s2203_s3 + $0x60] sm:$0xff] }
  0x23   : > { %554 = vmatpush.msra.mxu2 %v533_v42  ;;  %619 = vmatpush.msra.mxu3 %v549_v44  ;;  %v547_v49 = vld [vmem:[%s2203_s3 + $0xe8] sm:$0xff]  ;;  %v529_v50 = vld [vmem:[%s2203_s3 + $0x58] sm:$0xff]  ;;  %v546_v51 = vld [vmem:[%s2203_s3 + $0xe0] sm:$0xff] }
  0x24   : > { %364 = vmatpush.msra.mxu0 %v332_v17  ;;  %429 = vmatpush.msra.mxu1 %v333_v18  ;;  %v528_v52 = vld [vmem:[%s2203_s3 + $0x50] sm:$0xff]  ;;  %v545_v53 = vld [vmem:[%s2203_s3 + $0xd8] sm:$0xff]  ;;  %v527_v54 = vld [vmem:[%s2203_s3 + $0x48] sm:$0xff] }
  0x25   : > { %555 = vmatpush.msra.mxu2 %v532_v43  ;;  %620 = vmatpush.msra.mxu3 %v548_v45  ;;  %v544_v55 = vld [vmem:[%s2203_s3 + $0xd0] sm:$0xff]  ;;  %v526_v57 = vld [vmem:[%s2203_s3 + $0x40] sm:$0xff]  ;;  %v543_v58 = vld [vmem:[%s2203_s3 + $0xc8] sm:$0xff] }
  0x26   : > { %365 = vmatpush.msra.mxu0 %v330_v19  ;;  %430 = vmatpush.msra.mxu1 %v331_v20  ;;  %v312_v56 = vld [vmem:[%s1826_s23 + $0x50] sm:$0xff]  ;;  %v525_v59 = vld [vmem:[%s2203_s3 + $0x38] sm:$0xff]  ;;  %v542_v60 = vld [vmem:[%s2203_s3 + $0xc0] sm:$0xff] }
  0x27   : > { %556 = vmatpush.msra.mxu2 %v531_v46  ;;  %621 = vmatpush.msra.mxu3 %v547_v49  ;;  %v524_v61 = vld [vmem:[%s2203_s3 + $0x30] sm:$0xff]  ;;  %v541_v62 = vld [vmem:[%s2203_s3 + $0xb8] sm:$0xff]  ;;  %v523_v63 = vld [vmem:[%s2203_s3 + $0x28] sm:$0xff] }
  0x28   : > { %366 = vmatpush.msra.mxu0 %v328_v21  ;;  %431 = vmatpush.msra.mxu1 %v329_v22  ;;  %v540_v0 = vld [vmem:[%s2203_s3 + $0xb0] sm:$0xff]  ;;  %v313_v1 = vld [vmem:[%s1826_s23 + $0x58] sm:$0xff]  ;;  %v522_v2 = vld [vmem:[%s2203_s3 + $0x20] sm:$0xff] }
  0x29   : > { %557 = vmatpush.msra.mxu2 %v530_v48  ;;  %622 = vmatpush.msra.mxu3 %v546_v51  ;;  %v539_v3 = vld [vmem:[%s2203_s3 + $0xa8] sm:$0xff]  ;;  %v521_v4 = vld [vmem:[%s2203_s3 + $0x18] sm:$0xff]  ;;  %v538_v5 = vld [vmem:[%s2203_s3 + $0xa0] sm:$0xff] }
  0x2a   : > { %367 = vmatpush.msra.mxu0 %v326_v23  ;;  %432 = vmatpush.msra.mxu1 %v327_v24  ;;  %v520_v6 = vld [vmem:[%s2203_s3 + $0x10] sm:$0xff]  ;;  %v537_v7 = vld [vmem:[%s2203_s3 + $0x98] sm:$0xff]  ;;  %v314_v8 = vld [vmem:[%s1826_s23 + $0x60] sm:$0xff] }
  0x2b   : > { %558 = vmatpush.msra.mxu2 %v529_v50  ;;  %623 = vmatpush.msra.mxu3 %v545_v53  ;;  %v519_v9 = vld [vmem:[%s2203_s3 + $0x8] sm:$0xff]  ;;  %v536_v10 = vld [vmem:[%s2203_s3 + $0x90] sm:$0xff]  ;;  %v518_v11 = vld [vmem:[%s2203_s3] sm:$0xff] }
  0x2c   : > { %368 = vmatpush.msra.mxu0 %v324_v25  ;;  %433 = vmatpush.msra.mxu1 %v325_v26  ;;  %v535_v12 = vld [vmem:[%s2203_s3 + $0x88] sm:$0xff]  ;;  %v534_v13 = vld [vmem:[%s2203_s3 + $0x80] sm:$0xff]  ;;  %v316_v15 = vld [vmem:[%s1826_s23 + $0x70] sm:$0xff] }
  0x2d   : > { %559 = vmatpush.msra.mxu2 %v528_v52  ;;  %624 = vmatpush.msra.mxu3 %v544_v55  ;;  %v315_v14 = vld [vmem:[%s1826_s23 + $0x68] sm:$0xff]  ;;  %v317_v16 = vld [vmem:[%s1826_s23 + $0x78] sm:$0xff]  ;;  %v350_v17 = vld [vmem:[%s2202_s2] sm:$0x3] }
  0x2e   : > { %369 = vmatpush.msra.mxu0 %v322_v27  ;;  %434 = vmatpush.msra.mxu1 %v323_v28  ;;  %v1949_v18 = vperm.slane %v350_v17, 0  ;;  %v1951_v19 = vperm.slane %v350_v17, 1 }
  0x2f   : > { %560 = vmatpush.msra.mxu2 %v527_v54  ;;  %625 = vmatpush.msra.mxu3 %v543_v58 }
  0x30   : > { %370 = vmatpush.msra.mxu0 %v320_v29  ;;  %435 = vmatpush.msra.mxu1 %v321_v30 }
  0x31   : > { %561 = vmatpush.msra.mxu2 %v526_v57  ;;  %626 = vmatpush.msra.mxu3 %v542_v60 }
  0x32   : > { %371 = vmatpush.msra.mxu0 %v318_v31  ;;  %436 = vmatpush.msra.mxu1 %v319_v32 }
  0x33   : > { %372 = vmatmul.f32.vlgmr.msra.gmra.mxu0 %v302_v33  ;;  %437 = vmatmul.f32.vlgmr.msra.gmra.mxu1 %v302_v33 }
  0x34   : > { %562 = vmatpush.msra.mxu2 %v525_v59  ;;  %627 = vmatpush.msra.mxu3 %v541_v62 }
  0x36   : > { %563 = vmatpush.msra.mxu2 %v524_v61  ;;  %628 = vmatpush.msra.mxu3 %v540_v0 }
  0x38   : > { %564 = vmatpush.msra.mxu2 %v523_v63  ;;  %629 = vmatpush.msra.mxu3 %v539_v3 }
  0x3a   : > { %565 = vmatpush.msra.mxu2 %v522_v2  ;;  %630 = vmatpush.msra.mxu3 %v538_v5 }
  0x3b   : > { %375 = vmatmul.f32.gmra.mxu0 %v303_v34  ;;  %440 = vmatmul.f32.gmra.mxu1 %v303_v34 }
  0x3c   : > { %566 = vmatpush.msra.mxu2 %v521_v4  ;;  %631 = vmatpush.msra.mxu3 %v537_v7 }
  0x3e   : > { %567 = vmatpush.msra.mxu2 %v520_v6  ;;  %632 = vmatpush.msra.mxu3 %v536_v10 }
  0x40   : > { %568 = vmatpush.msra.mxu2 %v519_v9  ;;  %633 = vmatpush.msra.mxu3 %v535_v12 }
  0x42   : > { %569 = vmatpush.msra.mxu2 %v518_v11  ;;  %634 = vmatpush.msra.mxu3 %v534_v13 }
  0x43   : > { %378 = vmatmul.f32.gmra.mxu0 %v304_v35  ;;  %443 = vmatmul.f32.gmra.mxu1 %v304_v35 }
  0x4b   : > { %381 = vmatmul.f32.gmra.mxu0 %v305_v36  ;;  %446 = vmatmul.f32.gmra.mxu1 %v305_v36 }
  0x53   : > { %384 = vmatmul.f32.gmra.mxu0 %v306_v37  ;;  %449 = vmatmul.f32.gmra.mxu1 %v306_v37 }
  0x5b   : > { %387 = vmatmul.f32.gmra.mxu0 %v307_v38  ;;  %452 = vmatmul.f32.gmra.mxu1 %v307_v38 }
  0x63   : > { %390 = vmatmul.f32.gmra.mxu0 %v308_v39  ;;  %455 = vmatmul.f32.gmra.mxu1 %v308_v39 }
  0x6b   : > { %393 = vmatmul.f32.gmra.mxu0 %v309_v40  ;;  %458 = vmatmul.f32.gmra.mxu1 %v309_v40 }
  0x73   : > { %396 = vmatmul.f32.gmra.mxu0 %v310_v41  ;;  %461 = vmatmul.f32.gmra.mxu1 %v310_v41 }
  0x7b   : > { %399 = vmatmul.f32.gmra.mxu0 %v311_v47  ;;  %464 = vmatmul.f32.gmra.mxu1 %v311_v47 }
  0x83   : > { %402 = vmatmul.f32.gmra.mxu0 %v312_v56  ;;  %467 = vmatmul.f32.gmra.mxu1 %v312_v56 }
  0x8b   : > { %405 = vmatmul.f32.gmra.mxu0 %v313_v1  ;;  %470 = vmatmul.f32.gmra.mxu1 %v313_v1 }
  0x93   : > { %408 = vmatmul.f32.gmra.mxu0 %v314_v8  ;;  %473 = vmatmul.f32.gmra.mxu1 %v314_v8 }
  0x9b   : > { %411 = vmatmul.f32.gmra.mxu0 %v315_v14  ;;  %476 = vmatmul.f32.gmra.mxu1 %v315_v14 }
  0xa3   : > { %414 = vmatmul.f32.gmra.mxu0 %v316_v15  ;;  %479 = vmatmul.f32.gmra.mxu1 %v316_v15 }
  0xab   : > { %417 = vmatmul.f32.gmra.mxu0 %v317_v16  ;;  %482 = vmatmul.f32.gmra.mxu1 %v317_v16 }
  0xb0   : > { %v373_v20 = vpop.f32.mrf.mxu0  ;;  %v438_v21 = vpop.f32.mrf.mxu1 }
  0xb1   : > { %v374_v22 = vadd.f32 %v373_v20, %v1949_v18  ;;  %v439_v23 = vadd.f32 %v438_v21, %v1951_v19 }
  0xb3   : > { %v486_v24 = vmax.f32 %v374_v22, 0.0  ;;  %v487_v25 = vmax.f32 %v439_v23, 0.0 }
  0xb5   : > { %570 = vmatmul.f32.vlgmr.msra.gmra.mxu2 %v486_v24  ;;  %635 = vmatmul.f32.vlgmr.msra.gmra.mxu3 %v487_v25 }
  0xb8   : > { %v376_v26 = vpop.f32.mrf.mxu0  ;;  %v441_v27 = vpop.f32.mrf.mxu1 }
  0xb9   : > { %v377_v28 = vadd.f32 %v376_v26, %v1949_v18  ;;  %v442_v29 = vadd.f32 %v441_v27, %v1951_v19 }
  0xbb   : > { %v488_v30 = vmax.f32 %v377_v28, 0.0  ;;  %v489_v31 = vmax.f32 %v442_v29, 0.0 }
  0xbd   : > { %573 = vmatmul.f32.gmra.mxu2 %v488_v30  ;;  %638 = vmatmul.f32.gmra.mxu3 %v489_v31 }
  0xc0   : > { %v379_v32 = vpop.f32.mrf.mxu0  ;;  %v444_v33 = vpop.f32.mrf.mxu1 }
  0xc1   : > { %v380_v34 = vadd.f32 %v379_v32, %v1949_v18  ;;  %v445_v35 = vadd.f32 %v444_v33, %v1951_v19 }
  0xc3   : > { %v490_v36 = vmax.f32 %v380_v34, 0.0  ;;  %v491_v37 = vmax.f32 %v445_v35, 0.0 }
  0xc5   : > { %576 = vmatmul.f32.gmra.mxu2 %v490_v36  ;;  %641 = vmatmul.f32.gmra.mxu3 %v491_v37 }
  0xc8   : > { %v382_v38 = vpop.f32.mrf.mxu0  ;;  %v447_v39 = vpop.f32.mrf.mxu1 }
  0xc9   : > { %v383_v40 = vadd.f32 %v382_v38, %v1949_v18  ;;  %v448_v41 = vadd.f32 %v447_v39, %v1951_v19 }
  0xcb   : > { %v492_v42 = vmax.f32 %v383_v40, 0.0  ;;  %v493_v43 = vmax.f32 %v448_v41, 0.0 }
  0xcd   : > { %579 = vmatmul.f32.gmra.mxu2 %v492_v42  ;;  %644 = vmatmul.f32.gmra.mxu3 %v493_v43 }
  0xd0   : > { %v385_v44 = vpop.f32.mrf.mxu0  ;;  %v450_v45 = vpop.f32.mrf.mxu1 }
  0xd1   : > { %v386_v46 = vadd.f32 %v385_v44, %v1949_v18  ;;  %v451_v47 = vadd.f32 %v450_v45, %v1951_v19 }
  0xd3   : > { %v494_v48 = vmax.f32 %v386_v46, 0.0  ;;  %v495_v49 = vmax.f32 %v451_v47, 0.0 }
  0xd5   : > { %582 = vmatmul.f32.gmra.mxu2 %v494_v48  ;;  %647 = vmatmul.f32.gmra.mxu3 %v495_v49 }
  0xd8   : > { %v388_v50 = vpop.f32.mrf.mxu0  ;;  %v453_v51 = vpop.f32.mrf.mxu1 }
  0xd9   : > { %v389_v52 = vadd.f32 %v388_v50, %v1949_v18  ;;  %v454_v53 = vadd.f32 %v453_v51, %v1951_v19 }
  0xdb   : > { %v496_v54 = vmax.f32 %v389_v52, 0.0  ;;  %v497_v55 = vmax.f32 %v454_v53, 0.0 }
  0xdd   : > { %585 = vmatmul.f32.gmra.mxu2 %v496_v54  ;;  %650 = vmatmul.f32.gmra.mxu3 %v497_v55  ;;  %v1988_v54 = vld [vmem:[%s2204_s4] ss:$0 sm:$0xff] }
  0xe0   : > { %v391_v56 = vpop.f32.mrf.mxu0  ;;  %v456_v57 = vpop.f32.mrf.mxu1 }
  0xe1   : > { %v392_v58 = vadd.f32 %v391_v56, %v1949_v18  ;;  %v457_v59 = vadd.f32 %v456_v57, %v1951_v19 }
  0xe3   : > { %v498_v60 = vmax.f32 %v392_v58, 0.0  ;;  %v499_v61 = vmax.f32 %v457_v59, 0.0 }
  0xe5   : > { %588 = vmatmul.f32.gmra.mxu2 %v498_v60  ;;  %653 = vmatmul.f32.gmra.mxu3 %v499_v61 }
  0xe8   : > { %v394_v62 = vpop.f32.mrf.mxu0  ;;  %v459_v63 = vpop.f32.mrf.mxu1 }
  0xe9   : > { %v395_v0 = vadd.f32 %v394_v62, %v1949_v18  ;;  %v460_v1 = vadd.f32 %v459_v63, %v1951_v19 }
  0xeb   : > { %v500_v2 = vmax.f32 %v395_v0, 0.0  ;;  %v501_v3 = vmax.f32 %v460_v1, 0.0 }
  0xed   : > { %591 = vmatmul.f32.gmra.mxu2 %v500_v2  ;;  %656 = vmatmul.f32.gmra.mxu3 %v501_v3 }
  0xf0   : > { %v397_v4 = vpop.f32.mrf.mxu0  ;;  %v462_v5 = vpop.f32.mrf.mxu1 }
  0xf1   : > { %v398_v6 = vadd.f32 %v397_v4, %v1949_v18  ;;  %v463_v7 = vadd.f32 %v462_v5, %v1951_v19 }
  0xf3   : > { %v502_v8 = vmax.f32 %v398_v6, 0.0  ;;  %v503_v9 = vmax.f32 %v463_v7, 0.0 }
  0xf5   : > { %594 = vmatmul.f32.gmra.mxu2 %v502_v8  ;;  %659 = vmatmul.f32.gmra.mxu3 %v503_v9 }
  0xf8   : > { %v400_v10 = vpop.f32.mrf.mxu0  ;;  %v465_v11 = vpop.f32.mrf.mxu1 }
  0xf9   : > { %v401_v12 = vadd.f32 %v400_v10, %v1949_v18  ;;  %v466_v13 = vadd.f32 %v465_v11, %v1951_v19 }
  0xfb   : > { %v504_v14 = vmax.f32 %v401_v12, 0.0  ;;  %v505_v15 = vmax.f32 %v466_v13, 0.0 }
  0xfd   : > { %597 = vmatmul.f32.gmra.mxu2 %v504_v14  ;;  %662 = vmatmul.f32.gmra.mxu3 %v505_v15 }
 0x100   : > { %v403_v16 = vpop.f32.mrf.mxu0  ;;  %v468_v17 = vpop.f32.mrf.mxu1 }
 0x101   : > { %v404_v20 = vadd.f32 %v403_v16, %v1949_v18  ;;  %v469_v21 = vadd.f32 %v468_v17, %v1951_v19 }
 0x103   : > { %v506_v22 = vmax.f32 %v404_v20, 0.0  ;;  %v507_v23 = vmax.f32 %v469_v21, 0.0 }
 0x105   : > { %600 = vmatmul.f32.gmra.mxu2 %v506_v22  ;;  %665 = vmatmul.f32.gmra.mxu3 %v507_v23 }
 0x108   : > { %v406_v24 = vpop.f32.mrf.mxu0  ;;  %v471_v25 = vpop.f32.mrf.mxu1 }
 0x109   : > { %v407_v26 = vadd.f32 %v406_v24, %v1949_v18  ;;  %v472_v27 = vadd.f32 %v471_v25, %v1951_v19 }
 0x10b   : > { %v508_v28 = vmax.f32 %v407_v26, 0.0  ;;  %v509_v29 = vmax.f32 %v472_v27, 0.0 }
 0x10d   : > { %603 = vmatmul.f32.gmra.mxu2 %v508_v28  ;;  %668 = vmatmul.f32.gmra.mxu3 %v509_v29 }
 0x110   : > { %v409_v30 = vpop.f32.mrf.mxu0  ;;  %v474_v31 = vpop.f32.mrf.mxu1 }
 0x111   : > { %v410_v32 = vadd.f32 %v409_v30, %v1949_v18  ;;  %v475_v33 = vadd.f32 %v474_v31, %v1951_v19 }
 0x113   : > { %v510_v34 = vmax.f32 %v410_v32, 0.0  ;;  %v511_v35 = vmax.f32 %v475_v33, 0.0 }
 0x115   : > { %606 = vmatmul.f32.gmra.mxu2 %v510_v34  ;;  %671 = vmatmul.f32.gmra.mxu3 %v511_v35 }
 0x118   : > { %v412_v36 = vpop.f32.mrf.mxu0  ;;  %v477_v37 = vpop.f32.mrf.mxu1 }
 0x119   : > { %v413_v38 = vadd.f32 %v412_v36, %v1949_v18  ;;  %v478_v39 = vadd.f32 %v477_v37, %v1951_v19 }
 0x11b   : > { %v512_v40 = vmax.f32 %v413_v38, 0.0  ;;  %v513_v41 = vmax.f32 %v478_v39, 0.0 }
 0x11d   : > { %609 = vmatmul.f32.gmra.mxu2 %v512_v40  ;;  %674 = vmatmul.f32.gmra.mxu3 %v513_v41 }
 0x120   : > { %v415_v42 = vpop.f32.mrf.mxu0  ;;  %v480_v43 = vpop.f32.mrf.mxu1 }
 0x121   : > { %v416_v44 = vadd.f32 %v415_v42, %v1949_v18  ;;  %v481_v45 = vadd.f32 %v480_v43, %v1951_v19 }
 0x123   : > { %v514_v46 = vmax.f32 %v416_v44, 0.0  ;;  %v515_v47 = vmax.f32 %v481_v45, 0.0 }
 0x125   : > { %612 = vmatmul.f32.gmra.mxu2 %v514_v46  ;;  %677 = vmatmul.f32.gmra.mxu3 %v515_v47 }
 0x128   : > { %v418_v48 = vpop.f32.mrf.mxu0  ;;  %v483_v49 = vpop.f32.mrf.mxu1 }
 0x129   : > { %v419_v50 = vadd.f32 %v418_v48, %v1949_v18  ;;  %v484_v51 = vadd.f32 %v483_v49, %v1951_v19  ;;  %v1994_v18 = vld [vmem:[%s2205_s5] ss:$0 sm:$0xff] }
 0x12b   : > { %v516_v52 = vmax.f32 %v419_v50, 0.0  ;;  %v517_v53 = vmax.f32 %v484_v51, 0.0 }
 0x12d   : > { %615 = vmatmul.f32.gmra.mxu2 %v516_v52  ;;  %680 = vmatmul.f32.gmra.mxu3 %v517_v53 }
 0x138   : > { %v571_v55 = vpop.f32.mrf.mxu2  ;;  %v636_v56 = vpop.f32.mrf.mxu3 }
 0x139   : > { %v572_v57 = vadd.f32 %v1988_v54, %v571_v55 }
 0x13b   : > { %v637_v58 = vadd.f32 %v636_v56, %v572_v57 }
 0x13d   : > { %v684_v19 = vmax.f32 %v637_v58, 0.0 }
 0x13f   : > { %v704_v59 = vmul.f32 %v1994_v18, %v684_v19 }
 0x140   : > { %v574_v60 = vpop.f32.mrf.mxu2  ;;  %v639_v61 = vpop.f32.mrf.mxu3 }
 0x141   : > { %v575_v62 = vadd.f32 %v1988_v54, %v574_v60  ;;  %v721_v63 = vsel %vm720_vm0, %v704_v59, 0.0 }
 0x142   : > { %722 = vadd.xlane.f32.xlu0 %v721_v63 }
 0x143   : > { %v640_v0 = vadd.f32 %v639_v61, %v575_v62 }
 0x145   : > { %v685_v1 = vmax.f32 %v640_v0, 0.0 }
 0x147   : > { %v705_v2 = vmul.f32 %v1994_v18, %v685_v1 }
 0x148   : > { %v577_v3 = vpop.f32.mrf.mxu2  ;;  %v642_v4 = vpop.f32.mrf.mxu3 }
 0x149   : > { %v578_v5 = vadd.f32 %v1988_v54, %v577_v3  ;;  %v724_v6 = vsel %vm720_vm0, %v705_v2, 0.0 }
 0x14a   : > { %725 = vadd.xlane.f32.xlu0 %v724_v6 }
 0x14b   : > { %v643_v7 = vadd.f32 %v642_v4, %v578_v5 }
 0x14d   : > { %v686_v8 = vmax.f32 %v643_v7, 0.0 }
 0x14f   : > { %v706_v9 = vmul.f32 %v1994_v18, %v686_v8 }
 0x150   : > { %v580_v10 = vpop.f32.mrf.mxu2  ;;  %v645_v11 = vpop.f32.mrf.mxu3 }
 0x151   : > { %v581_v12 = vadd.f32 %v1988_v54, %v580_v10  ;;  %v727_v13 = vsel %vm720_vm0, %v706_v9, 0.0 }
 0x152   : > { %728 = vadd.xlane.f32.xlu1 %v727_v13 }
 0x153   : > { %v646_v14 = vadd.f32 %v645_v11, %v581_v12 }
 0x155   : > { %v687_v15 = vmax.f32 %v646_v14, 0.0 }
 0x157   : > { %v707_v16 = vmul.f32 %v1994_v18, %v687_v15 }
 0x158   : > { %v583_v17 = vpop.f32.mrf.mxu2  ;;  %v648_v20 = vpop.f32.mrf.mxu3 }
 0x159   : > { %v584_v21 = vadd.f32 %v1988_v54, %v583_v17  ;;  %v730_v22 = vsel %vm720_vm0, %v707_v16, 0.0 }
 0x15a   : > { %731 = vadd.xlane.f32.xlu1 %v730_v22 }
 0x15b   : > { %v649_v23 = vadd.f32 %v648_v20, %v584_v21 }
 0x15d   : > { %v688_v24 = vmax.f32 %v649_v23, 0.0 }
 0x15f   : > { %v708_v25 = vmul.f32 %v1994_v18, %v688_v24 }
 0x160   : > { %v586_v26 = vpop.f32.mrf.mxu2  ;;  %v651_v27 = vpop.f32.mrf.mxu3 }
 0x161   : > { %v587_v28 = vadd.f32 %v1988_v54, %v586_v26  ;;  %v733_v29 = vsel %vm720_vm0, %v708_v25, 0.0 }
 0x162   : > { %734 = vadd.xlane.f32.xlu2 %v733_v29 }
 0x163   : > { %v652_v30 = vadd.f32 %v651_v27, %v587_v28 }
 0x165   : > { %v689_v31 = vmax.f32 %v652_v30, 0.0 }
 0x167   : > { %v709_v32 = vmul.f32 %v1994_v18, %v689_v31 }
 0x168   : > { %v589_v33 = vpop.f32.mrf.mxu2  ;;  %v654_v34 = vpop.f32.mrf.mxu3 }
 0x169   : > { %v590_v35 = vadd.f32 %v1988_v54, %v589_v33  ;;  %v736_v36 = vsel %vm720_vm0, %v709_v32, 0.0 }
 0x16a   : > { %737 = vadd.xlane.f32.xlu2 %v736_v36 }
 0x16b   : > { %v655_v37 = vadd.f32 %v654_v34, %v590_v35 }
 0x16d   : > { %v690_v38 = vmax.f32 %v655_v37, 0.0 }
 0x16f   : > { %v710_v39 = vmul.f32 %v1994_v18, %v690_v38  ;;  %v2041_v38 = vld [vmem:[#allocation2] ss:$0 sm:$0xff] }
 0x170   : > { %v592_v40 = vpop.f32.mrf.mxu2  ;;  %v657_v41 = vpop.f32.mrf.mxu3 }
 0x171   : > { %v593_v42 = vadd.f32 %v1988_v54, %v592_v40  ;;  %v739_v43 = vsel %vm720_vm0, %v710_v39, 0.0 }
 0x172   : > { %740 = vadd.xlane.f32.xlu0 %v739_v43 }
 0x173   : > { %v658_v44 = vadd.f32 %v657_v41, %v593_v42 }
 0x175   : > { %v691_v45 = vmax.f32 %v658_v44, 0.0 }
 0x177   : > { %v711_v46 = vmul.f32 %v1994_v18, %v691_v45 }
 0x178   : > { %v595_v47 = vpop.f32.mrf.mxu2  ;;  %v660_v48 = vpop.f32.mrf.mxu3 }
 0x179   : > { %v596_v49 = vadd.f32 %v1988_v54, %v595_v47  ;;  %v742_v50 = vsel %vm720_vm0, %v711_v46, 0.0 }
 0x17a   : > { %743 = vadd.xlane.f32.xlu1 %v742_v50 }
 0x17b   : > { %v661_v51 = vadd.f32 %v660_v48, %v596_v49 }
 0x17d   : > { %v692_v52 = vmax.f32 %v661_v51, 0.0 }
 0x17f   : > { %v712_v53 = vmul.f32 %v1994_v18, %v692_v52 }
 0x180   : > { %v598_v55 = vpop.f32.mrf.mxu2  ;;  %v663_v56 = vpop.f32.mrf.mxu3 }
 0x181   : > { %v599_v57 = vadd.f32 %v1988_v54, %v598_v55  ;;  %v745_v58 = vsel %vm720_vm0, %v712_v53, 0.0 }
 0x182   : > { %746 = vadd.xlane.f32.xlu2 %v745_v58 }
 0x183   : > { %v664_v19 = vadd.f32 %v663_v56, %v599_v57 }
 0x185   : > { %v693_v59 = vmax.f32 %v664_v19, 0.0 }
 0x187   : > { %v713_v60 = vmul.f32 %v1994_v18, %v693_v59 }
 0x188   : > { %v601_v61 = vpop.f32.mrf.mxu2  ;;  %v666_v62 = vpop.f32.mrf.mxu3 }
 0x189   : > { %v602_v63 = vadd.f32 %v1988_v54, %v601_v61  ;;  %v748_v0 = vsel %vm720_vm0, %v713_v60, 0.0 }
 0x18a   : > { %749 = vadd.xlane.f32.xlu0 %v748_v0 }
 0x18b   : > { %v667_v1 = vadd.f32 %v666_v62, %v602_v63 }
 0x18d   : > { %v694_v2 = vmax.f32 %v667_v1, 0.0 }
 0x18f   : > { %v714_v3 = vmul.f32 %v1994_v18, %v694_v2 }
 0x190   : > { %v604_v4 = vpop.f32.mrf.mxu2  ;;  %v669_v5 = vpop.f32.mrf.mxu3 }
 0x191   : > { %v605_v6 = vadd.f32 %v1988_v54, %v604_v4  ;;  %v751_v7 = vsel %vm720_vm0, %v714_v3, 0.0 }
 0x192   : > { %752 = vadd.xlane.f32.xlu1 %v751_v7 }
 0x193   : > { %v670_v8 = vadd.f32 %v669_v5, %v605_v6 }
 0x195   : > { %v695_v9 = vmax.f32 %v670_v8, 0.0 }
 0x197   : > { %v715_v10 = vmul.f32 %v1994_v18, %v695_v9 }
 0x198   : > { %v607_v11 = vpop.f32.mrf.mxu2  ;;  %v672_v12 = vpop.f32.mrf.mxu3 }
 0x199   : > { %v608_v13 = vadd.f32 %v1988_v54, %v607_v11  ;;  %v754_v14 = vsel %vm720_vm0, %v715_v10, 0.0 }
 0x19a   : > { %755 = vadd.xlane.f32.xlu2 %v754_v14 }
 0x19b   : > { %v673_v15 = vadd.f32 %v672_v12, %v608_v13 }
 0x19d   : > { %v696_v16 = vmax.f32 %v673_v15, 0.0 }
 0x19f   : > { %v716_v17 = vmul.f32 %v1994_v18, %v696_v16 }
 0x1a0   : > { %v610_v20 = vpop.f32.mrf.mxu2  ;;  %v675_v21 = vpop.f32.mrf.mxu3 }
 0x1a1   : > { %v611_v22 = vadd.f32 %v1988_v54, %v610_v20  ;;  %v757_v23 = vsel %vm720_vm0, %v716_v17, 0.0 }
 0x1a2   : > { %758 = vadd.xlane.f32.xlu0 %v757_v23 }
 0x1a3   : > { %v676_v24 = vadd.f32 %v675_v21, %v611_v22 }
 0x1a5   : > { %v697_v25 = vmax.f32 %v676_v24, 0.0 }
 0x1a7   : > { %v717_v26 = vmul.f32 %v1994_v18, %v697_v25 }
 0x1a8   : > { %v613_v27 = vpop.f32.mrf.mxu2  ;;  %v678_v28 = vpop.f32.mrf.mxu3 }
 0x1a9   : > { %v614_v29 = vadd.f32 %v1988_v54, %v613_v27  ;;  %v760_v30 = vsel %vm720_vm0, %v717_v26, 0.0 }
 0x1aa   : > { %761 = vadd.xlane.f32.xlu1 %v760_v30 }
 0x1ab   : > { %v679_v31 = vadd.f32 %v678_v28, %v614_v29 }
 0x1ad   : > { %v698_v32 = vmax.f32 %v679_v31, 0.0 }
 0x1af   : > { %v718_v33 = vmul.f32 %v1994_v18, %v698_v32 }
 0x1b0   : > { %v616_v34 = vpop.f32.mrf.mxu2  ;;  %v681_v35 = vpop.f32.mrf.mxu3 }
 0x1b1   : > { %v617_v36 = vadd.f32 %v1988_v54, %v616_v34  ;;  %v763_v37 = vsel %vm720_vm0, %v718_v33, 0.0 }
 0x1b2   : > { %764 = vadd.xlane.f32.xlu2 %v763_v37 }
 0x1b3   : > { %v682_v39 = vadd.f32 %v681_v35, %v617_v36 }
 0x1b5   : > { %v699_v40 = vmax.f32 %v682_v39, 0.0  ;;  %v723_v41 = vpop.xlane.xlu0 %722 }
 0x1b6   : > { %v773_v42 = vadd.f32 %v2041_v38, %v723_v41 }
 0x1b7   : > { %v719_v43 = vmul.f32 %v1994_v18, %v699_v40 }
 0x1b8   : > { %v789_v44 = vsub.f32 0.0, %v773_v42 }
 0x1b9   : > { %v766_v45 = vsel %vm720_vm0, %v719_v43, 0.0 }
 0x1ba   : > { %v805_v46 = vmul.f32 1.442695, %v789_v44  ;;  %767 = vadd.xlane.f32.xlu0 %v766_v45 }
 0x1bc   : > { %1504 = vpow2.f32 %v805_v46 }
 0x1bd   : > { %v726_v47 = vpop.xlane.xlu0 %725 }
 0x1be   : > { %v774_v54 = vadd.f32 %v2041_v38, %v726_v47 }
 0x1c0   : > { %v790_v48 = vsub.f32 0.0, %v774_v54 }
 0x1c2   : > { %v1505_v49 = vpop.eup %1504  ;;  %v807_v50 = vmul.f32 1.442695, %v790_v48 }
 0x1c3   : > { %v837_v51 = vadd.f32 1.0, %v1505_v49 }
 0x1c4   : > { %1506 = vpow2.f32 %v807_v50 }
 0x1c5   : > { %1508 = vrcp.f32 %v837_v51  ;;  %v729_v52 = vpop.xlane.xlu1 %728  ;;  %v864_v62 = vand.u32 2147483648, %v837_v51  ;;  %v862_v0 = vand.u32 2147483647, %v837_v51  ;;  %vm858_vm2 = vweird.f32 %v837_v51 }
 0x1c6   : > { %v775_v53 = vadd.f32 %v2041_v38, %v729_v52 }
 0x1c7   : > { %v865_v6 = vor.u32 1.1754944e-38, %v864_v62  ;;  %vm863_vm5 = vcmp.eq.f32.partialorder %v862_v0, 8.507059e+37 }
 0x1c8   : > { %v791_v18 = vsub.f32 0.0, %v775_v53 }
 0x1ca   : > { %v1507_v55 = vpop.eup %1506  ;;  %v809_v56 = vmul.f32 1.442695, %v791_v18 }
 0x1cb   : > { %v1509_v57 = vpop.eup %1508  ;;  %v838_v58 = vadd.f32 1.0, %v1507_v55 }
 0x1cc   : > { %v854_v19 = vmul.f32 %v1509_v57, %v837_v51  ;;  %1510 = vpow2.f32 %v809_v56  ;;  %vm859_vm1 = vweird.f32 %v1509_v57 }
 0x1cd   : > { %1512 = vrcp.f32 %v838_v58  ;;  %v732_v59 = vpop.xlane.xlu1 %731  ;;  %vm860_vm4 = vmor %vm858_vm2, %vm859_vm1  ;;  %v879_v14 = vand.u32 2147483648, %v838_v58  ;;  %v877_v16 = vand.u32 2147483647, %v838_v58  ;;  %vm873_vm7 = vweird.f32 %v838_v58 }
 0x1ce   : > { %v855_v60 = vsub.f32 1.0, %v854_v19  ;;  %v776_v61 = vadd.f32 %v2041_v38, %v732_v59 }
 0x1cf   : > { %v880_v24 = vor.u32 1.1754944e-38, %v879_v14  ;;  %vm878_vm9 = vcmp.eq.f32.partialorder %v877_v16, 8.507059e+37 }
 0x1d0   : > { %v856_v63 = vmul.f32 %v1509_v57, %v855_v60  ;;  %v792_v1 = vsub.f32 0.0, %v776_v61 }
 0x1d2   : > { %v1511_v2 = vpop.eup %1510  ;;  %v857_v3 = vadd.f32 %v1509_v57, %v856_v63  ;;  %v811_v4 = vmul.f32 1.442695, %v792_v1 }
 0x1d3   : > { %v1513_v5 = vpop.eup %1512  ;;  %v839_v7 = vadd.f32 1.0, %v1511_v2 }
 0x1d4   : > { %v861_v8 = vsel %vm860_vm4, %v1509_v57, %v857_v3  ;;  %v869_v9 = vmul.f32 %v1513_v5, %v838_v58  ;;  %1514 = vpow2.f32 %v811_v4  ;;  %vm874_vm6 = vweird.f32 %v1513_v5 }
 0x1d5   : > { %v866_v10 = vsel %vm863_vm5, %v865_v6, %v861_v8  ;;  %1516 = vrcp.f32 %v839_v7  ;;  %v735_v11 = vpop.xlane.xlu2 %734  ;;  %vm875_vm8 = vmor %vm873_vm7, %vm874_vm6  ;;  %v894_v32 = vand.u32 2147483648, %v839_v7  ;;  %v892_v34 = vand.u32 2147483647, %v839_v7 }
 0x1d6   : > { %1094 = vst.msk [vmem:[%s2050_s26] sm:$0xff] %vm1093_vm3, %v866_v10  ;;  %v870_v12 = vsub.f32 1.0, %v869_v9  ;;  %v777_v13 = vadd.f32 %v2041_v38, %v735_v11  ;;  %vm888_vm11 = vweird.f32 %v839_v7 }
 0x1d7   : > { %v895_v41 = vor.u32 1.1754944e-38, %v894_v32  ;;  %vm893_vm13 = vcmp.eq.f32.partialorder %v892_v34, 8.507059e+37 }
 0x1d8   : > { %v871_v15 = vmul.f32 %v1513_v5, %v870_v12  ;;  %v793_v17 = vsub.f32 0.0, %v777_v13 }
 0x1da   : > { %v1515_v20 = vpop.eup %1514  ;;  %v872_v21 = vadd.f32 %v1513_v5, %v871_v15  ;;  %v813_v22 = vmul.f32 1.442695, %v793_v17 }
 0x1db   : > { %v1517_v23 = vpop.eup %1516  ;;  %v840_v25 = vadd.f32 1.0, %v1515_v20 }
 0x1dc   : > { %v876_v26 = vsel %vm875_vm8, %v1513_v5, %v872_v21  ;;  %v884_v27 = vmul.f32 %v1517_v23, %v839_v7  ;;  %1518 = vpow2.f32 %v813_v22  ;;  %vm889_vm10 = vweird.f32 %v1517_v23 }
 0x1dd   : > { %v881_v28 = vsel %vm878_vm9, %v880_v24, %v876_v26  ;;  %1520 = vrcp.f32 %v840_v25  ;;  %v738_v29 = vpop.xlane.xlu2 %737  ;;  %vm890_vm12 = vmor %vm888_vm11, %vm889_vm10  ;;  %v909_v48 = vand.u32 2147483648, %v840_v25  ;;  %v907_v50 = vand.u32 2147483647, %v840_v25 }
 0x1de   : > { %1095 = vst.msk [vmem:[%s2050_s26 + $0x8] sm:$0xff] %vm1093_vm3, %v881_v28  ;;  %v885_v30 = vsub.f32 1.0, %v884_v27  ;;  %v778_v31 = vadd.f32 %v2041_v38, %v738_v29  ;;  %vm903_vm15 = vweird.f32 %v840_v25 }
 0x1df   : > { %v910_v56 = vor.u32 1.1754944e-38, %v909_v48  ;;  %vm908_vm1 = vcmp.eq.f32.partialorder %v907_v50, 8.507059e+37 }
 0x1e0   : > { %v886_v33 = vmul.f32 %v1517_v23, %v885_v30  ;;  %v794_v35 = vsub.f32 0.0, %v778_v31 }
 0x1e2   : > { %v1519_v36 = vpop.eup %1518  ;;  %v887_v37 = vadd.f32 %v1517_v23, %v886_v33  ;;  %v815_v39 = vmul.f32 1.442695, %v794_v35 }
 0x1e3   : > { %v1521_v40 = vpop.eup %1520  ;;  %v841_v42 = vadd.f32 1.0, %v1519_v36 }
 0x1e4   : > { %v891_v43 = vsel %vm890_vm12, %v1517_v23, %v887_v37  ;;  %v899_v44 = vmul.f32 %v1521_v40, %v840_v25  ;;  %1522 = vpow2.f32 %v815_v39  ;;  %vm904_vm14 = vweird.f32 %v1521_v40 }
 0x1e5   : > { %v896_v45 = vsel %vm893_vm13, %v895_v41, %v891_v43  ;;  %1524 = vrcp.f32 %v841_v42  ;;  %v741_v46 = vpop.xlane.xlu0 %740  ;;  %vm905_vm0 = vmor %vm903_vm15, %vm904_vm14  ;;  %v924_v63 = vand.u32 2147483648, %v841_v42  ;;  %v922_v1 = vand.u32 2147483647, %v841_v42 }
 0x1e6   : > { %1096 = vst.msk [vmem:[%s2050_s26 + $0x10] sm:$0xff] %vm1093_vm3, %v896_v45  ;;  %v900_v47 = vsub.f32 1.0, %v899_v44  ;;  %v779_v54 = vadd.f32 %v2041_v38, %v741_v46  ;;  %vm918_vm4 = vweird.f32 %v841_v42 }
 0x1e7   : > { %v925_v7 = vor.u32 1.1754944e-38, %v924_v63  ;;  %vm923_vm6 = vcmp.eq.f32.partialorder %v922_v1, 8.507059e+37 }
 0x1e8   : > { %v901_v49 = vmul.f32 %v1521_v40, %v900_v47  ;;  %v795_v51 = vsub.f32 0.0, %v779_v54 }
 0x1ea   : > { %v1523_v52 = vpop.eup %1522  ;;  %v902_v53 = vadd.f32 %v1521_v40, %v901_v49  ;;  %v817_v18 = vmul.f32 1.442695, %v795_v51 }
 0x1eb   : > { %v1525_v55 = vpop.eup %1524  ;;  %v842_v57 = vadd.f32 1.0, %v1523_v52 }
 0x1ec   : > { %v906_v58 = vsel %vm905_vm0, %v1521_v40, %v902_v53  ;;  %v914_v19 = vmul.f32 %v1525_v55, %v841_v42  ;;  %1526 = vpow2.f32 %v817_v18  ;;  %vm919_vm2 = vweird.f32 %v1525_v55 }
 0x1ed   : > { %v911_v59 = vsel %vm908_vm1, %v910_v56, %v906_v58  ;;  %1528 = vrcp.f32 %v842_v57  ;;  %v744_v60 = vpop.xlane.xlu1 %743  ;;  %vm920_vm5 = vmor %vm918_vm4, %vm919_vm2  ;;  %v939_v15 = vand.u32 2147483648, %v842_v57  ;;  %v937_v17 = vand.u32 2147483647, %v842_v57 }
 0x1ee   : > { %1097 = vst.msk [vmem:[%s2050_s26 + $0x18] sm:$0xff] %vm1093_vm3, %v911_v59  ;;  %v915_v61 = vsub.f32 1.0, %v914_v19  ;;  %v780_v62 = vadd.f32 %v2041_v38, %v744_v60  ;;  %vm933_vm8 = vweird.f32 %v842_v57 }
 0x1ef   : > { %v940_v25 = vor.u32 1.1754944e-38, %v939_v15  ;;  %vm938_vm10 = vcmp.eq.f32.partialorder %v937_v17, 8.507059e+37 }
 0x1f0   : > { %v916_v0 = vmul.f32 %v1525_v55, %v915_v61  ;;  %v796_v2 = vsub.f32 0.0, %v780_v62 }
 0x1f2   : > { %v1527_v3 = vpop.eup %1526  ;;  %v917_v4 = vadd.f32 %v1525_v55, %v916_v0  ;;  %v819_v5 = vmul.f32 1.442695, %v796_v2 }
 0x1f3   : > { %v1529_v6 = vpop.eup %1528  ;;  %v843_v8 = vadd.f32 1.0, %v1527_v3 }
 0x1f4   : > { %v921_v9 = vsel %vm920_vm5, %v1525_v55, %v917_v4  ;;  %v929_v10 = vmul.f32 %v1529_v6, %v842_v57  ;;  %1530 = vpow2.f32 %v819_v5  ;;  %vm934_vm7 = vweird.f32 %v1529_v6 }
 0x1f5   : > { %v926_v11 = vsel %vm923_vm6, %v925_v7, %v921_v9  ;;  %1532 = vrcp.f32 %v843_v8  ;;  %v747_v12 = vpop.xlane.xlu2 %746  ;;  %vm935_vm9 = vmor %vm933_vm8, %vm934_vm7  ;;  %v954_v33 = vand.u32 2147483648, %v843_v8  ;;  %v952_v35 = vand.u32 2147483647, %v843_v8 }
 0x1f6   : > { %1098 = vst.msk [vmem:[%s2050_s26 + $0x20] sm:$0xff] %vm1093_vm3, %v926_v11  ;;  %v930_v13 = vsub.f32 1.0, %v929_v10  ;;  %v781_v14 = vadd.f32 %v2041_v38, %v747_v12  ;;  %vm948_vm12 = vweird.f32 %v843_v8 }
 0x1f7   : > { %v955_v42 = vor.u32 1.1754944e-38, %v954_v33  ;;  %vm953_vm14 = vcmp.eq.f32.partialorder %v952_v35, 8.507059e+37 }
 0x1f8   : > { %v931_v16 = vmul.f32 %v1529_v6, %v930_v13  ;;  %v797_v20 = vsub.f32 0.0, %v781_v14 }
 0x1fa   : > { %v1531_v21 = vpop.eup %1530  ;;  %v932_v22 = vadd.f32 %v1529_v6, %v931_v16  ;;  %v821_v23 = vmul.f32 1.442695, %v797_v20 }
 0x1fb   : > { %v1533_v24 = vpop.eup %1532  ;;  %v844_v26 = vadd.f32 1.0, %v1531_v21 }
 0x1fc   : > { %v936_v27 = vsel %vm935_vm9, %v1529_v6, %v932_v22  ;;  %v944_v28 = vmul.f32 %v1533_v24, %v843_v8  ;;  %1534 = vpow2.f32 %v821_v23  ;;  %vm949_vm11 = vweird.f32 %v1533_v24 }
 0x1fd   : > { %v941_v29 = vsel %vm938_vm10, %v940_v25, %v936_v27  ;;  %1536 = vrcp.f32 %v844_v26  ;;  %v750_v30 = vpop.xlane.xlu0 %749  ;;  %vm950_vm13 = vmor %vm948_vm12, %vm949_vm11  ;;  %v969_v49 = vand.u32 2147483648, %v844_v26  ;;  %v967_v51 = vand.u32 2147483647, %v844_v26 }
 0x1fe   : > { %1099 = vst.msk [vmem:[%s2050_s26 + $0x28] sm:$0xff] %vm1093_vm3, %v941_v29  ;;  %v945_v31 = vsub.f32 1.0, %v944_v28  ;;  %v782_v32 = vadd.f32 %v2041_v38, %v750_v30  ;;  %vm963_vm0 = vweird.f32 %v844_v26 }
 0x1ff   : > { %v970_v57 = vor.u32 1.1754944e-38, %v969_v49  ;;  %vm968_vm2 = vcmp.eq.f32.partialorder %v967_v51, 8.507059e+37 }
 0x200   : > { %v946_v34 = vmul.f32 %v1533_v24, %v945_v31  ;;  %v798_v36 = vsub.f32 0.0, %v782_v32 }
 0x202   : > { %v1535_v37 = vpop.eup %1534  ;;  %v947_v39 = vadd.f32 %v1533_v24, %v946_v34  ;;  %v823_v40 = vmul.f32 1.442695, %v798_v36 }
 0x203   : > { %v1537_v41 = vpop.eup %1536  ;;  %v845_v43 = vadd.f32 1.0, %v1535_v37 }
 0x204   : > { %v951_v44 = vsel %vm950_vm13, %v1533_v24, %v947_v39  ;;  %v959_v45 = vmul.f32 %v1537_v41, %v844_v26  ;;  %1538 = vpow2.f32 %v823_v40  ;;  %vm964_vm15 = vweird.f32 %v1537_v41 }
 0x205   : > { %v956_v46 = vsel %vm953_vm14, %v955_v42, %v951_v44  ;;  %1540 = vrcp.f32 %v845_v43  ;;  %v753_v47 = vpop.xlane.xlu1 %752  ;;  %vm965_vm1 = vmor %vm963_vm0, %vm964_vm15  ;;  %v984_v0 = vand.u32 2147483648, %v845_v43  ;;  %v982_v2 = vand.u32 2147483647, %v845_v43 }
 0x206   : > { %1100 = vst.msk [vmem:[%s2050_s26 + $0x30] sm:$0xff] %vm1093_vm3, %v956_v46  ;;  %v960_v54 = vsub.f32 1.0, %v959_v45  ;;  %v783_v48 = vadd.f32 %v2041_v38, %v753_v47  ;;  %vm978_vm5 = vweird.f32 %v845_v43 }
 0x207   : > { %v985_v8 = vor.u32 1.1754944e-38, %v984_v0  ;;  %vm983_vm7 = vcmp.eq.f32.partialorder %v982_v2, 8.507059e+37 }
 0x208   : > { %v961_v50 = vmul.f32 %v1537_v41, %v960_v54  ;;  %v799_v52 = vsub.f32 0.0, %v783_v48 }
 0x20a   : > { %v1539_v53 = vpop.eup %1538  ;;  %v962_v18 = vadd.f32 %v1537_v41, %v961_v50  ;;  %v825_v55 = vmul.f32 1.442695, %v799_v52 }
 0x20b   : > { %v1541_v56 = vpop.eup %1540  ;;  %v846_v58 = vadd.f32 1.0, %v1539_v53 }
 0x20c   : > { %v966_v19 = vsel %vm965_vm1, %v1537_v41, %v962_v18  ;;  %v974_v59 = vmul.f32 %v1541_v56, %v845_v43  ;;  %1542 = vpow2.f32 %v825_v55  ;;  %vm979_vm4 = vweird.f32 %v1541_v56 }
 0x20d   : > { %v971_v60 = vsel %vm968_vm2, %v970_v57, %v966_v19  ;;  %1544 = vrcp.f32 %v846_v58  ;;  %v756_v61 = vpop.xlane.xlu2 %755  ;;  %vm980_vm6 = vmor %vm978_vm5, %vm979_vm4  ;;  %v999_v16 = vand.u32 2147483648, %v846_v58  ;;  %v997_v20 = vand.u32 2147483647, %v846_v58 }
 0x20e   : > { %1101 = vst.msk [vmem:[%s2050_s26 + $0x38] sm:$0xff] %vm1093_vm3, %v971_v60  ;;  %v975_v62 = vsub.f32 1.0, %v974_v59  ;;  %v784_v63 = vadd.f32 %v2041_v38, %v756_v61  ;;  %vm993_vm9 = vweird.f32 %v846_v58 }
 0x20f   : > { %v1000_v26 = vor.u32 1.1754944e-38, %v999_v16  ;;  %vm998_vm11 = vcmp.eq.f32.partialorder %v997_v20, 8.507059e+37 }
 0x210   : > { %v976_v1 = vmul.f32 %v1541_v56, %v975_v62  ;;  %v800_v3 = vsub.f32 0.0, %v784_v63 }
 0x212   : > { %v1543_v4 = vpop.eup %1542  ;;  %v977_v5 = vadd.f32 %v1541_v56, %v976_v1  ;;  %v827_v6 = vmul.f32 1.442695, %v800_v3 }
 0x213   : > { %v1545_v7 = vpop.eup %1544  ;;  %v847_v9 = vadd.f32 1.0, %v1543_v4 }
 0x214   : > { %v981_v10 = vsel %vm980_vm6, %v1541_v56, %v977_v5  ;;  %v989_v11 = vmul.f32 %v1545_v7, %v846_v58  ;;  %1546 = vpow2.f32 %v827_v6  ;;  %vm994_vm8 = vweird.f32 %v1545_v7 }
 0x215   : > { %v986_v12 = vsel %vm983_vm7, %v985_v8, %v981_v10  ;;  %1548 = vrcp.f32 %v847_v9  ;;  %v759_v13 = vpop.xlane.xlu0 %758  ;;  %vm995_vm10 = vmor %vm993_vm9, %vm994_vm8  ;;  %v1014_v34 = vand.u32 2147483648, %v847_v9  ;;  %v1012_v36 = vand.u32 2147483647, %v847_v9 }
 0x216   : > { %1102 = vst.msk [vmem:[%s2050_s26 + $0x40] sm:$0xff] %vm1093_vm3, %v986_v12  ;;  %v990_v14 = vsub.f32 1.0, %v989_v11  ;;  %v785_v15 = vadd.f32 %v2041_v38, %v759_v13  ;;  %vm1008_vm13 = vweird.f32 %v847_v9 }
 0x217   : > { %v1015_v43 = vor.u32 1.1754944e-38, %v1014_v34  ;;  %vm1013_vm15 = vcmp.eq.f32.partialorder %v1012_v36, 8.507059e+37 }
 0x218   : > { %v991_v17 = vmul.f32 %v1545_v7, %v990_v14  ;;  %v801_v21 = vsub.f32 0.0, %v785_v15 }
 0x21a   : > { %v1547_v22 = vpop.eup %1546  ;;  %v992_v23 = vadd.f32 %v1545_v7, %v991_v17  ;;  %v829_v24 = vmul.f32 1.442695, %v801_v21 }
 0x21b   : > { %v1549_v25 = vpop.eup %1548  ;;  %v848_v27 = vadd.f32 1.0, %v1547_v22 }
 0x21c   : > { %v996_v28 = vsel %vm995_vm10, %v1545_v7, %v992_v23  ;;  %v1004_v29 = vmul.f32 %v1549_v25, %v847_v9  ;;  %1550 = vpow2.f32 %v829_v24  ;;  %vm1009_vm12 = vweird.f32 %v1549_v25 }
 0x21d   : > { %v1001_v30 = vsel %vm998_vm11, %v1000_v26, %v996_v28  ;;  %1552 = vrcp.f32 %v848_v27  ;;  %v762_v31 = vpop.xlane.xlu1 %761  ;;  %vm1010_vm14 = vmor %vm1008_vm13, %vm1009_vm12  ;;  %v1029_v50 = vand.u32 2147483648, %v848_v27  ;;  %v1027_v52 = vand.u32 2147483647, %v848_v27 }
 0x21e   : > { %1103 = vst.msk [vmem:[%s2050_s26 + $0x48] sm:$0xff] %vm1093_vm3, %v1001_v30  ;;  %v1005_v32 = vsub.f32 1.0, %v1004_v29  ;;  %v786_v33 = vadd.f32 %v2041_v38, %v762_v31  ;;  %vm1023_vm1 = vweird.f32 %v848_v27 }
 0x21f   : > { %v1030_v58 = vor.u32 1.1754944e-38, %v1029_v50  ;;  %vm1028_vm4 = vcmp.eq.f32.partialorder %v1027_v52, 8.507059e+37 }
 0x220   : > { %v1006_v35 = vmul.f32 %v1549_v25, %v1005_v32  ;;  %v802_v37 = vsub.f32 0.0, %v786_v33 }
 0x222   : > { %v1551_v39 = vpop.eup %1550  ;;  %v1007_v40 = vadd.f32 %v1549_v25, %v1006_v35  ;;  %v831_v41 = vmul.f32 1.442695, %v802_v37 }
 0x223   : > { %v1553_v42 = vpop.eup %1552  ;;  %v849_v44 = vadd.f32 1.0, %v1551_v39 }
 0x224   : > { %v1011_v45 = vsel %vm1010_vm14, %v1549_v25, %v1007_v40  ;;  %v1019_v46 = vmul.f32 %v1553_v42, %v848_v27  ;;  %1554 = vpow2.f32 %v831_v41  ;;  %vm1024_vm0 = vweird.f32 %v1553_v42 }
 0x225   : > { %v1016_v47 = vsel %vm1013_vm15, %v1015_v43, %v1011_v45  ;;  %1556 = vrcp.f32 %v849_v44  ;;  %v765_v54 = vpop.xlane.xlu2 %764  ;;  %vm1025_vm2 = vmor %vm1023_vm1, %vm1024_vm0  ;;  %v1044_v1 = vand.u32 2147483648, %v849_v44  ;;  %v1042_v3 = vand.u32 2147483647, %v849_v44 }
 0x226   : > { %1104 = vst.msk [vmem:[%s2050_s26 + $0x50] sm:$0xff] %vm1093_vm3, %v1016_v47  ;;  %v1020_v48 = vsub.f32 1.0, %v1019_v46  ;;  %v787_v49 = vadd.f32 %v2041_v38, %v765_v54  ;;  %vm1038_vm6 = vweird.f32 %v849_v44 }
 0x227   : > { %v1045_v9 = vor.u32 1.1754944e-38, %v1044_v1  ;;  %vm1043_vm8 = vcmp.eq.f32.partialorder %v1042_v3, 8.507059e+37 }
 0x228   : > { %v1021_v51 = vmul.f32 %v1553_v42, %v1020_v48  ;;  %v803_v53 = vsub.f32 0.0, %v787_v49 }
 0x22a   : > { %v1555_v18 = vpop.eup %1554  ;;  %v1022_v55 = vadd.f32 %v1553_v42, %v1021_v51  ;;  %v833_v56 = vmul.f32 1.442695, %v803_v53 }
 0x22b   : > { %v1557_v57 = vpop.eup %1556  ;;  %v850_v19 = vadd.f32 1.0, %v1555_v18 }
 0x22c   : > { %v1026_v59 = vsel %vm1025_vm2, %v1553_v42, %v1022_v55  ;;  %v1034_v60 = vmul.f32 %v1557_v57, %v849_v44  ;;  %1558 = vpow2.f32 %v833_v56  ;;  %vm1039_vm5 = vweird.f32 %v1557_v57 }
 0x22d   : > { %v1031_v61 = vsel %vm1028_vm4, %v1030_v58, %v1026_v59  ;;  %1560 = vrcp.f32 %v850_v19  ;;  %v768_v62 = vpop.xlane.xlu0 %767  ;;  %vm1040_vm7 = vmor %vm1038_vm6, %vm1039_vm5  ;;  %v1059_v14 = vand.u32 2147483648, %v850_v19  ;;  %v1057_v16 = vand.u32 2147483647, %v850_v19 }
 0x22e   : > { %1105 = vst.msk [vmem:[%s2050_s26 + $0x58] sm:$0xff] %vm1093_vm3, %v1031_v61  ;;  %v1035_v63 = vsub.f32 1.0, %v1034_v60  ;;  %v788_v0 = vadd.f32 %v2041_v38, %v768_v62  ;;  %vm1053_vm10 = vweird.f32 %v850_v19 }
 0x22f   : > { %v1060_v22 = vor.u32 1.1754944e-38, %v1059_v14  ;;  %vm1058_vm12 = vcmp.eq.f32.partialorder %v1057_v16, 8.507059e+37 }
 0x230   : > { %v1036_v2 = vmul.f32 %v1557_v57, %v1035_v63  ;;  %v804_v4 = vsub.f32 0.0, %v788_v0 }
 0x232   : > { %v1559_v5 = vpop.eup %1558  ;;  %v1037_v6 = vadd.f32 %v1557_v57, %v1036_v2  ;;  %v835_v7 = vmul.f32 1.442695, %v804_v4 }
 0x233   : > { %v1561_v8 = vpop.eup %1560  ;;  %v851_v10 = vadd.f32 1.0, %v1559_v5 }
 0x234   : > { %v1041_v11 = vsel %vm1040_vm7, %v1557_v57, %v1037_v6  ;;  %v1049_v12 = vmul.f32 %v1561_v8, %v850_v19  ;;  %1562 = vpow2.f32 %v835_v7  ;;  %vm1054_vm9 = vweird.f32 %v1561_v8 }
 0x235   : > { %v1046_v13 = vsel %vm1043_vm8, %v1045_v9, %v1041_v11  ;;  %1564 = vrcp.f32 %v851_v10  ;;  %vm1055_vm11 = vmor %vm1053_vm10, %vm1054_vm9  ;;  %v1074_v28 = vand.u32 2147483648, %v851_v10  ;;  %v1072_v30 = vand.u32 2147483647, %v851_v10 }
 0x236   : > { %1106 = vst.msk [vmem:[%s2050_s26 + $0x60] sm:$0xff] %vm1093_vm3, %v1046_v13  ;;  %v1050_v38 = vsub.f32 1.0, %v1049_v12  ;;  %vm1068_vm14 = vweird.f32 %v851_v10 }
 0x237   : > { %v1075_v33 = vor.u32 1.1754944e-38, %v1074_v28  ;;  %vm1073_vm0 = vcmp.eq.f32.partialorder %v1072_v30, 8.507059e+37 }
 0x238   : > { %v1051_v15 = vmul.f32 %v1561_v8, %v1050_v38 }
 0x23a   : > { %v1563_v17 = vpop.eup %1562  ;;  %v1052_v20 = vadd.f32 %v1561_v8, %v1051_v15 }
 0x23b   : > { %v1565_v21 = vpop.eup %1564  ;;  %v852_v23 = vadd.f32 1.0, %v1563_v17 }
 0x23c   : > { %v1056_v24 = vsel %vm1055_vm11, %v1561_v8, %v1052_v20  ;;  %v1064_v25 = vmul.f32 %v1565_v21, %v851_v10  ;;  %vm1069_vm13 = vweird.f32 %v1565_v21 }
 0x23d   : > { %v1061_v26 = vsel %vm1058_vm12, %v1060_v22, %v1056_v24  ;;  %1566 = vrcp.f32 %v852_v23  ;;  %vm1070_vm15 = vmor %vm1068_vm14, %vm1069_vm13  ;;  %v1089_v39 = vand.u32 2147483648, %v852_v23  ;;  %v1087_v41 = vand.u32 2147483647, %v852_v23 }
 0x23e   : > { %1107 = vst.msk [vmem:[%s2050_s26 + $0x68] sm:$0xff] %vm1093_vm3, %v1061_v26  ;;  %v1065_v27 = vsub.f32 1.0, %v1064_v25  ;;  %vm1083_vm2 = vweird.f32 %v852_v23 }
 0x23f   : > { %v1090_v43 = vor.u32 1.1754944e-38, %v1089_v39  ;;  %vm1088_vm5 = vcmp.eq.f32.partialorder %v1087_v41, 8.507059e+37 }
 0x240   : > { %v1066_v29 = vmul.f32 %v1565_v21, %v1065_v27 }
 0x242   : > { %v1067_v31 = vadd.f32 %v1565_v21, %v1066_v29 }
 0x243   : > { %v1567_v32 = vpop.eup %1566 }
 0x244   : > { %v1071_v34 = vsel %vm1070_vm15, %v1565_v21, %v1067_v31  ;;  %v1079_v35 = vmul.f32 %v1567_v32, %v852_v23  ;;  %vm1084_vm1 = vweird.f32 %v1567_v32 }
 0x245   : > { %v1076_v36 = vsel %vm1073_vm0, %v1075_v33, %v1071_v34  ;;  %vm1085_vm4 = vmor %vm1083_vm2, %vm1084_vm1 }
 0x246   : > { %1108 = vst.msk [vmem:[%s2050_s26 + $0x70] sm:$0xff] %vm1093_vm3, %v1076_v36  ;;  %v1080_v37 = vsub.f32 1.0, %v1079_v35 }
 0x248   : > { %v1081_v40 = vmul.f32 %v1567_v32, %v1080_v37 }
 0x24a   : > { %v1082_v42 = vadd.f32 %v1567_v32, %v1081_v40  ;;  %1116 = sbr.rel (!%p1724_p4) target bundleno = 639 (0x27f), region = 52 }
 0x24c   : > { %v1086_v44 = vsel %vm1085_vm4, %v1567_v32, %v1082_v42 }
 0x24d   : > { %v1091_v45 = vsel %vm1088_vm5, %v1090_v43, %v1086_v44 }
 0x24e   : > { %1109 = vst.msk [vmem:[%s2050_s26 + $0x78] sm:$0xff] %vm1093_vm3, %v1091_v45 }
 0x24f   : > { %s2218_s18 = smov (!%p1119_p8, %s1118_s18), 16 }
 0x250   : > { %s1395_s24 = sshll.u32 %s2218_s18, 3 }
 0x251   : > { %p1398_p9 = scmp.eq.s32.totalorder %s1395_s24, 0 }
 0x252   : > { %s2109_s28 = sshrl.u32 (!%p1398_p9), %s2218_s18, 4 }
 0x253   : > { %1127 = sbr.rel (%p1398_p9) target bundleno = 639 (0x27f), region = 56  ;;  %p1399_p10 = scmp.le.s32.totalorder (!%p1398_p9), %s2109_s28, 0 }
 0x258   : > { %1342 = sbr.rel (%p1399_p10) target bundleno = 622 (0x26e), region = 132  ;;  %s2209_s6 = smov (!%p1399_p10), %s2103_s20 }
 0x259   : > { %s2210_s10 = smov (!%p1399_p10), %s2050_s26  ;;  %s2118_s25 = smov (!%p1399_p10), 0  }
 0x25a   : > { %s2120_s30 = smov (!%p1399_p10), 0  }
 0x25d LB: >> { %v1220_v46 = vld [vmem:[%s1630_s10] sm:$0xff]  ;;  %v1222_v47 = vld [vmem:[%s1630_s10 + $0x8] sm:$0xff]  ;;  %v1224_v54 = vld [vmem:[%s1630_s10 + $0x10] sm:$0xff]  ;;  %s1252_s8 = sadd.s32 1, %s1634_s25  ;;  %s1214_s30 = sadd.s32 1, %s1638_s30   ;;  %s1638_s30 = sphi %s2120_s30, %s1214_s30   ;;  %s1634_s25 = sphi %s2118_s25, %s2213_s25   ;;  %s1630_s10 = sphi %s2210_s10, %s2212_s10   ;;  %s1626_s6 = sphi %s2209_s6, %s2211_s6  }
 0x25e   : >> { %1221 = vst [vmem:[%s1626_s6] sm:$0xff] %v1220_v46  ;;  %v1226_v48 = vld [vmem:[%s1630_s10 + $0x18] sm:$0xff]  ;;  %p1253_p11 = scmp.ge.s32.totalorder %s1252_s8, %s2109_s28  ;;  %v1228_v49 = vld [vmem:[%s1630_s10 + $0x20] sm:$0xff]  ;;  %v1230_v50 = vld [vmem:[%s1630_s10 + $0x28] sm:$0xff]  ;;  %p1213_p12 = scmp.ge.s32.totalorder %s1214_s30, %s2109_s28 }
 0x25f   : >> { %1223 = vst [vmem:[%s1626_s6 + $0x8] sm:$0xff] %v1222_v47  ;;  %v1232_v51 = vld [vmem:[%s1630_s10 + $0x30] sm:$0xff]  ;;  %v1234_v52 = vld [vmem:[%s1630_s10 + $0x38] sm:$0xff]  ;;  %v1236_v53 = vld [vmem:[%s1630_s10 + $0x40] sm:$0xff] }
 0x260   : >> { %1225 = vst [vmem:[%s1626_s6 + $0x10] sm:$0xff] %v1224_v54  ;;  %s2220_s8 = smov (%p1253_p11, %s1252_s8), 0  ;;  %v1238_v18 = vld [vmem:[%s1630_s10 + $0x48] sm:$0xff]  ;;  %v1240_v55 = vld [vmem:[%s1630_s10 + $0x50] sm:$0xff]  ;;  %v1242_v56 = vld [vmem:[%s1630_s10 + $0x58] sm:$0xff] }
 0x261   : >> { %1227 = vst [vmem:[%s1626_s6 + $0x18] sm:$0xff] %v1226_v48  ;;  %s1400_s11 = sshll.u32 %s2220_s8, 7  ;;  %v1244_v57 = vld [vmem:[%s1630_s10 + $0x60] sm:$0xff]  ;;  %v1246_v58 = vld [vmem:[%s1630_s10 + $0x68] sm:$0xff]  ;;  %v1248_v19 = vld [vmem:[%s1630_s10 + $0x70] sm:$0xff]  ;;  %s2213_s25 = smov %s2220_s8 }
 0x262   : >> { %1229 = vst [vmem:[%s1626_s6 + $0x20] sm:$0xff] %v1228_v49  ;;  %s1257_s12 = scalar_lea.vmem %s2050_s26, %s1400_s11 [#allocation3]   ;;  %s1258_s23 = scalar_lea.vmem %s2103_s20, %s1400_s11   ;;  %v1250_v59 = vld [vmem:[%s1630_s10 + $0x78] sm:$0xff] }
 0x263   : >> { %1231 = vst [vmem:[%s1626_s6 + $0x28] sm:$0xff] %v1230_v50  ;;  %s2212_s10 = smov %s1257_s12 }
 0x264   : >> { %1233 = vst [vmem:[%s1626_s6 + $0x30] sm:$0xff] %v1232_v51 }
 0x265   : >> { %1235 = vst [vmem:[%s1626_s6 + $0x38] sm:$0xff] %v1234_v52 }
 0x266   : >> { %1237 = vst [vmem:[%s1626_s6 + $0x40] sm:$0xff] %v1236_v53 }
 0x267   : >> { %1239 = vst [vmem:[%s1626_s6 + $0x48] sm:$0xff] %v1238_v18 }
 0x268   : >> { %1241 = vst [vmem:[%s1626_s6 + $0x50] sm:$0xff] %v1240_v55 }
 0x269   : >> { %1243 = vst [vmem:[%s1626_s6 + $0x58] sm:$0xff] %v1242_v56  ;;  %1216 = sbr.rel (!%p1213_p12) target bundleno = 605 (0x25d), region = 138 }
 0x26a   : >> { %1245 = vst [vmem:[%s1626_s6 + $0x60] sm:$0xff] %v1244_v57 }
 0x26b   : >> { %1247 = vst [vmem:[%s1626_s6 + $0x68] sm:$0xff] %v1246_v58 }
 0x26c   : >> { %1249 = vst [vmem:[%s1626_s6 + $0x70] sm:$0xff] %v1248_v19 }
 0x26d   : >> { %1251 = vst [vmem:[%s1626_s6 + $0x78] sm:$0xff] %v1250_v59  ;;  %s2211_s6 = smov %s1258_s23 }
 0x26e PF: > { %s2182_s13 = sand.u32 15, %s2218_s18   ;;  %s1411_s14 = sshll.u32 %s2109_s28, 7 }
 0x26f   : > { %s1263_s15 = scalar_lea.vmem %s2050_s26, %s1411_s14 [#allocation3]   ;;  %s1265_s16 = scalar_lea.vmem %s2103_s20, %s1411_s14  }
 0x270   : > { %p1405_p13 = scmp.le.s32.totalorder %s2182_s13, 0 }
 0x271   : > { %s1640_s17 = smov (!%p1405_p13), %s1265_s16   ;;  %s1644_s19 = smov (!%p1405_p13), %s1263_s15  }
 0x272   : > { %1356 = sbr.rel (%p1405_p13) target bundleno = 639 (0x27f), region = 143  ;;  %s1648_s21 = smov (!%p1405_p13), 0  }
 0x273   : > { %s1652_s22 = smov (!%p1405_p13), 0  }
 0x277 LB: >> { %v1275_v60 = vld [vmem:[%s1646_s19] sm:$0xff]  ;;  %s1277_s18 = sadd.s32 1, %s1650_s21  ;;  %s1269_s22 = sadd.s32 1, %s1654_s22   ;;  %s1654_s22 = sphi %s1652_s22, %s1269_s22   ;;  %s1650_s21 = sphi %s1648_s21, %s1649_s21   ;;  %s1646_s19 = sphi %s1644_s19, %s1282_s19   ;;  %s1642_s17 = sphi %s1640_s17, %s1283_s17  }
 0x278   : >> { %1276 = vst [vmem:[%s1642_s17] sm:$0xff] %v1275_v60  ;;  %p1278_p0 = scmp.ge.s32.totalorder %s1277_s18, %s2182_s13  ;;  %p1268_p1 = scmp.ge.s32.totalorder %s1269_s22, %s2182_s13 }
 0x27a   : >> { %s2222_s18 = smov (%p1278_p0, %s1277_s18), 0  ;;  %1271 = sbr.rel (!%p1268_p1) target bundleno = 631 (0x277), region = 149 }
 0x27b   : >> { %s1406_s26 = sshll.u32 %s2222_s18, 3  ;;  %s1649_s21 = smov %s2222_s18  }
 0x27c   : >> { %s1282_s19 = scalar_lea.vmem %s1263_s15, %s1406_s26 [#allocation3]   ;;  %s1283_s17 = scalar_lea.vmem %s1265_s16, %s1406_s26  }
 0x27f PF: > { %p16_p2 = scmp.ge.s32.totalorder %s1714_s29, 4   ;;  %s2214_s26 = smov %s1618_s27 }
 0x280   : > { %s2215_s27 = smov %s1722_s9  ;;  %s2216_s28 = smov %s1714_s29 }
 0x281   :  { %18 = sbr.rel (!%p16_p2) target bundleno = 5 (0x5), region = 160 }

</bundles_post_ra>
